<compile_context>
chip_gen: v6e
topology: v6e:2x2x1
jax: 0.10.0
libtpu: 0.0.40
codegen_flags: <defaults>
</compile_context>

<pallas_src>
import functools
import math

import jax
import jax.numpy as jnp
import numpy as np
from jax.experimental import pallas as pl
from jax.experimental.pallas import tpu as pltpu


def _gate_kernel(x_ref, w_ref, o_ref, *, threshold):
    # x_ref: (TB, N, D) batch tile of the input, in x.dtype
    # w_ref: (N, D)     per-token weight slab (grid-invariant, resident in VMEM)
    # o_ref: (TB, N, 1) hard 0/1 gate (float32)
    x = x_ref[...]                                   # (TB, N, D)
    w = w_ref[...]                                   # (N, D), broadcasts over batch dim
    prod = (x * w).astype(jnp.float32)               # VPU multiply in x.dtype, f32 accumulate
    s = jnp.sum(prod, axis=-1, keepdims=True)        # (TB, N, 1) lane reduce
    o_ref[...] = (s > threshold).astype(jnp.float32)


def _round_up(a, b):
    return -(-a // b) * b


def _choose_batch_tile(B, N, D, itemsize):
    """Batch rows per grid step.

    Budget ~8 MiB for the x tile (the pipeline double-buffers it -> ~16 MiB
    resident), sized with the padded (8,128) VMEM layout and the real itemsize.
    Cap at ceil(B/2) so v7x's two TensorCores both get grid steps.
    """
    tile_budget_bytes = 8 * 1024 * 1024
    per_row = _round_up(N, 8) * _round_up(D, 128) * itemsize   # one batch-row slab in VMEM
    tb = max(1, min(B, tile_budget_bytes // per_row))
    if B >= 2:
        tb = min(tb, -(-B // 2))                               # guarantee >= 2 grid steps
    return tb


def multi_head_feature_gate(x, W, *, n_head, dropout_rate=0.5):
    """Pallas TPU forward pass of MultiHeadFeatureGate(stype='specific').

    x: (B, N, D) float (f32 or bf16)
    W: (1, 1, n_head, D // n_head, 1) float
    returns: (B, N, 1) float32 hard gate (forward value of the STE expression).
    """
    B, N, D = x.shape
    H = n_head
    assert D % H == 0
    # The literal torch.matmul broadcast only works when n_tokens == n_head;
    # the weight row is then selected by the token index.
    assert N == H, "PyTorch reference only broadcasts when n_tokens == n_head"
    assert 0.0 < dropout_rate < 1.0

    # sigmoid(s / H) > p  <=>  s > H * logit(p): fold sigmoid + STE into one compare.
    threshold = float(H * math.log(dropout_rate / (1.0 - dropout_rate)))

    # Per-token weight slab (N, D): w[n, h*dh + k] = W[0, 0, n, k, 0], cast to x.dtype.
    # Small (N*D elements), built once, DMA'd once (grid-invariant index_map).
    w_slab = jnp.tile(W[0, 0, :, :, 0], (1, H)).astype(x.dtype)      # (N, D)

    TB = _choose_batch_tile(B, N, D, x.dtype.itemsize)
    grid = pl.cdiv(B, TB)                                            # ragged last block OK

    kernel = functools.partial(_gate_kernel, threshold=threshold)

    out = pl.pallas_call(
        kernel,
        out_shape=jax.ShapeDtypeStruct((B, N, 1), jnp.float32),
        grid_spec=pltpu.PrefetchScalarGridSpec(
            num_scalar_prefetch=0,
            grid=(grid,),
            in_specs=[
                pl.BlockSpec((TB, N, D), lambda i: (i, 0, 0)),  # batch tile of x
                pl.BlockSpec((N, D), lambda i: (0, 0)),         # weight slab, resident
            ],
            out_specs=pl.BlockSpec((TB, N, 1), lambda i: (i, 0, 0)),
        ),
        compiler_params=pltpu.CompilerParams(
            dimension_semantics=("parallel",),
            # 2 x 8 MiB double-buffered x + tiny weight/output << 48 MiB:
            # fits v7x (64 MiB/TC) with headroom, trivially fits v6e/v5e (128 MiB).
            vmem_limit_bytes=48 * 1024 * 1024,
        ),
    )(x, w_slab)

    return out


if __name__ == "__main__":
    key = jax.random.PRNGKey(0)
    B, n_tokens, d_token, n_head = 2, 4, 32, 4     # n_tokens == n_head (see note above)
    dropout_rate = 0.5

    kx, kw = jax.random.split(key)
    x = jax.random.normal(kx, (B, n_tokens, d_token), dtype=jnp.float32)

    # Deterministic stand-in for nn.init.kaiming_uniform_(W, a=sqrt(5)):
    # fan_in = n_head * (d_token // n_head) = d_token, bound = 1 / sqrt(fan_in).
    bound = 1.0 / math.sqrt(d_token)
    W = jax.random.uniform(
        kw, (1, 1, n_head, d_token // n_head, 1),
        minval=-bound, maxval=bound, dtype=jnp.float32,
    )

    out = multi_head_feature_gate(x, W, n_head=n_head, dropout_rate=dropout_rate)
    out = jax.block_until_ready(out)

    # Pure-JAX reference with the literal PyTorch semantics.
    w_eff = W[0, 0, :, :, 0]                                   # (H, D/H)
    xr = x.reshape(B, n_tokens, n_head, d_token // n_head)
    pre = jnp.einsum("bnhk,nk->bnh", xr, w_eff)                # weight row picked by token
    m = jax.nn.sigmoid(pre.mean(-1))
    ref = ((m > dropout_rate).astype(jnp.float32) - m + m)[..., None]
    np.testing.assert_allclose(np.asarray(out), np.asarray(ref), rtol=1e-5, atol=1e-5)

    assert out.shape == (B, n_tokens, 1) and out.dtype == jnp.float32
    print("KERNEL_OK")
</pallas_src>

<mosaic_0001>
module attributes {stable_mosaic.version = 11 : i64} {
  func.func @_gate_kernel(%arg0: i32, %arg1: memref<1x4x32xf32, #tpu.memory_space<vmem>>, %arg2: memref<4x32xf32, #tpu.memory_space<vmem>>, %arg3: memref<1x4x1xf32, #tpu.memory_space<vmem>>) attributes {dimension_semantics = [#tpu.dimension_semantics<parallel>], iteration_bounds = array<i64: 2>, scalar_prefetch = 0 : i64, scratch_operands = 0 : i64, tpu.core_type = #tpu.core_type<tc>, window_params = [{transform_indices = @transform_0, window_bounds = array<i64: 1, 4, 32>}, {pipeline_mode = #tpu.pipeline_mode<synchronous>, transform_indices = @transform_1, window_bounds = array<i64: 4, 32>}, {transform_indices = @transform_2, window_bounds = array<i64: 1, 4, 1>}]} {
    %c0 = arith.constant 0 : index
    %c0_0 = arith.constant 0 : index
    %c0_1 = arith.constant 0 : index
    %0 = vector.load %arg1[%c0, %c0_0, %c0_1] : memref<1x4x32xf32, #tpu.memory_space<vmem>>, vector<1x4x32xf32>
    %c0_2 = arith.constant 0 : index
    %c0_3 = arith.constant 0 : index
    %1 = vector.load %arg2[%c0_2, %c0_3] : memref<4x32xf32, #tpu.memory_space<vmem>>, vector<4x32xf32>
    %2 = vector.shape_cast %1 : vector<4x32xf32> to vector<1x4x32xf32>
    %3 = arith.mulf %0, %2 : vector<1x4x32xf32>
    %cst = arith.constant dense<0.000000e+00> : vector<1x4xf32>
    %4 = vector.multi_reduction <add>, %3, %cst [2] : vector<1x4x32xf32> to vector<1x4xf32>
    %5 = vector.shape_cast %4 : vector<1x4xf32> to vector<1x4x1xf32>
    %cst_4 = arith.constant 0.000000e+00 : f32
    %6 = vector.broadcast %cst_4 : f32 to vector<1x4x1xf32>
    %7 = arith.cmpf ogt, %5, %6 : vector<1x4x1xf32>
    %8 = arith.extui %7 : vector<1x4x1xi1> to vector<1x4x1xi32>
    %9 = arith.sitofp %8 : vector<1x4x1xi32> to vector<1x4x1xf32>
    %c0_5 = arith.constant 0 : index
    %c0_6 = arith.constant 0 : index
    %c0_7 = arith.constant 0 : index
    %10 = vector.load %arg3[%c0_5, %c0_6, %c0_7] : memref<1x4x1xf32, #tpu.memory_space<vmem>>, vector<1x4x1xf32>
    tpu.vector_store %arg3[%c0_5, %c0_6, %c0_7], %9 {strides = array<i32>} : memref<1x4x1xf32, #tpu.memory_space<vmem>>, vector<1x4x1xf32>,
    return
  }
  func.func @transform_0(%arg0: i32) -> (i32, i32, i32) {
    %c0_i32 = arith.constant 0 : i32
    %c0_i32_0 = arith.constant 0 : i32
    %c0_i32_1 = arith.constant 0 : i32
    return %arg0, %c0_i32, %c0_i32_0 : i32, i32, i32
  }
  func.func @transform_1(%arg0: i32) -> (i32, i32) {
    %c0_i32 = arith.constant 0 : i32
    %c0_i32_0 = arith.constant 0 : i32
    %c0_i32_1 = arith.constant 0 : i32
    return %c0_i32, %c0_i32_0 : i32, i32
  }
  func.func @transform_2(%arg0: i32) -> (i32, i32, i32) {
    %c0_i32 = arith.constant 0 : i32
    %c0_i32_0 = arith.constant 0 : i32
    %c0_i32_1 = arith.constant 0 : i32
    return %arg0, %c0_i32, %c0_i32_0 : i32, i32, i32
  }
}

</mosaic_0001>

<bundles_post_ra>
// kernel: tpu_custom_call.1
= control target key start
LH: loop header
LB: loop body
LE: loop exit
PB: predicated region body
PF: predicated region fallthrough
CT: control target
= control target key end

     0   :  { %7 = vsyncpa [#allocation3], 0  ;;  %s561_s0 = inlined_call_operand.hbm [shape: f32[2,4,32], index: 0, kind: input, shape index: {}]   ;;  %s562_s1 = inlined_call_operand.hbm [shape: f32[4,32], index: 1, kind: input, shape index: {}]   ;;  %s563_s2 = inlined_call_operand.vmem [shape: f32[2,4,1], index: 2, kind: output, shape index: {}]  }
   0x1   :  { %9 = vsyncpa [#allocation3 + $0x1], 0 }
   0x2   :  { %10 = vsyncpa [#allocation5], 0  ;;  %s435_s9 = smov 0   ;;  %s437_s10 = smov 0  }
   0x3   :  { %s439_s11 = smov 0   ;;  %s441_s12 = smov 0  }
   0x4 LB: > { %s454_s13 = sadd.s32 4294967295, %s415_s12   ;;  %p36_p0 = scmp.ne.s32.totalorder %s407_s10, %s403_s9  ;;  %s415_s12 = sphi %s441_s12, %s579_s12   ;;  %s411_s11 = sphi %s439_s11, %s578_s11   ;;  %s407_s10 = sphi %s437_s10, %s577_s10   ;;  %s403_s9 = sphi %s435_s9, %s576_s9  }
   0x5   : > { %p564_p1 = scmp.eq.s32.totalorder %s454_s13, 0  ;;  %p260_p2 = scmp.ge.s32.totalorder %s415_s12, 1 }
   0x6   : > { %p94_p3 = scmp.lt.s32.totalorder %s415_s12, 3  ;;  %s417_s16 = smov [#allocation4]  }
   0x7   : > { %p462_p4 = por %p564_p1, %p36_p0  ;;  %s107_s17 = sshll.u32 %s417_s16, 4  ;;  %s108_s17 = int_to_ptr.vmem [resolvable:$true] %s107_s17 }
   0x8   : > { %p466_p5 = pnand %p260_p2, %p94_p3  ;;  %s473_s18 = sadd.s32 1, %s415_s12  }
   0x9   : > { %s567_s14 = scalar_select %p462_p4, 1, 0 }
   0xa   : > { %s568_s15 = scalar_select %p466_p5, 1, 0 }
   0xb   : > { %p278_p6 = pneg %p466_p5  ;;  %s20_s20 = ssub.s32 %s415_s12, %s473_s18 }
   0xc   : > { %p483_p8 = scmp.eq.s32.totalorder %s20_s20, 0  ;;  %s23_s22 = sadd.s32 1, %s411_s11 }
   0xd   : > { %p477_p7 = pnand %p278_p6, %p564_p1  ;;  %p30_p9 = scmp.ne.s32.totalorder %s411_s11, %s407_s10 }
   0xe   : > { %s334_s23 = scalar_lea.vmem %s108_s17, 64  ;;  %p342_p0 = scmp.lt.s32.totalorder %s108_s17, %s108_s17 }
   0xf   : > { %p325_p10 = pneg %p477_p7  ;;  %p335_p11 = scmp.ne.s32.totalorder %s108_s17, %s334_s23 }
  0x10   : > { %p343_p2 = scmp.lt.s32.totalorder %s334_s23, %s334_s23 }
  0x11   : > { %p337_p12 = pnand %p335_p11, %p325_p10 }
  0x12   : > { %p344_p3 = por %p343_p2, %p342_p0 }
  0x13   : > { %p338_p13 = pneg %p337_p12 }
  0x15   : > { %p345_p6 = pnand %p344_p3, %p338_p13 }
  0x17   : > { %348 = shalt.err (!%p345_p6)
}
  0x18   : > { %281 = dma.hbm_to_vmem [thread:$0]  (!%p477_p7), %s562_s1, 64, %s108_s17, [#allocation5]  }
  0x19   : > { %s500_s26 = scalar_select %p483_p8, %s411_s11, %s23_s22  }
  0x1a   : > { %p31_p10 = scmp.eq.s32.totalorder %s415_s12, 0  ;;  %p287_p11 = scmp.lt.s32.totalorder %s415_s12, 2 }
  0x1b   : > { %s118_s27 = sand.u32 1, %s411_s11   ;;  %s264_s28 = sshll.u32 %s415_s12, 6 }
  0x1c   : > { %p32_p12 = por %p31_p10, %p30_p9  ;;  %s263_s29 = sshll.u32 %s118_s27, 2 }
  0x1d   : > { %s512_s4 = scalar_lea.hbm %s561_s0, %s264_s28  ;;  %s122_s6 = scalar_lea.vmem [#allocation2], %s263_s29 }
  0x1e   : > { %p514_p13 = pnand %p287_p11, %p32_p12  ;;  %s129_s7 = sshll.u32 %s122_s6, 4  ;;  %s130_s7 = int_to_ptr.vmem [resolvable:$true] %s129_s7 }
  0x1f   : > { %s119_s8 = scalar_lea.sflag [#allocation3], %s118_s27  ;;  %s349_s9 = scalar_lea.hbm %s512_s4, 64 }
  0x20   : > { %p350_p7 = scmp.ne.s32.totalorder %s512_s4, %s349_s9  ;;  %p351_p8 = pneg %p514_p13 }
  0x21   : > { %s354_s17 = scalar_lea.hbm %s561_s0, 128  ;;  %p355_p2 = scmp.lt.s32.totalorder %s512_s4, %s561_s0 }
  0x22   : > { %p352_p9 = pnand %p351_p8, %p350_p7  ;;  %p356_p3 = scmp.lt.s32.totalorder %s354_s17, %s349_s9 }
  0x24   : > { %p353_p0 = pneg %p352_p9  ;;  %p357_p6 = por %p356_p3, %p355_p2 }
  0x26   : > { %p358_p10 = pnand %p357_p6, %p353_p0 }
  0x28   : > { %361 = shalt.err (!%p358_p10)
}
  0x29   : > { %s362_s21 = scalar_lea.vmem %s130_s7, 64  ;;  %s418_s22 = smov [#allocation2]  }
  0x2a   : > { %p363_p11 = scmp.ne.s32.totalorder %s130_s7, %s362_s21  ;;  %s367_s23 = sshll.u32 %s418_s22, 4  ;;  %s368_s23 = int_to_ptr.vmem [resolvable:$false] %s367_s23 }
  0x2b   : > { %s369_s24 = scalar_lea.vmem %s368_s23, 128  ;;  %p370_p7 = scmp.lt.s32.totalorder %s130_s7, %s368_s23 }
  0x2c   : > { %p365_p12 = pnand %p363_p11, %p351_p8  ;;  %p371_p9 = scmp.lt.s32.totalorder %s369_s24, %s362_s21 }
  0x2e   : > { %p366_p1 = pneg %p365_p12  ;;  %p372_p4 = por %p371_p9, %p370_p7 }
  0x30   : > { %p373_p5 = pnand %p372_p4, %p366_p1 }
  0x32   : > { %376 = shalt.err (!%p373_p5)
}
  0x33   : > { %285 = dma.hbm_to_vmem [thread:$0]  (!%p514_p13), %s512_s4, 64, %s130_s7, %s119_s8  }
  0x34   : > { %p572_p0 = scmp.ne.s32.totalorder %s568_s15, 0 }
  0x35   : > { %s140_s25 = sand.u32 (!%p572_p0), 1, %s407_s10   ;;  %p573_p8 = scmp.ne.s32.totalorder (!%p572_p0), %s567_s14, 0 }
  0x36   : > { %138 = sbr.rel (%p572_p0) target bundleno = 208 (0xd0), region = 28  ;;  %s266_s27 = sshll.u32 (!%p572_p0), %s140_s25, 2 }
  0x37   : > { %s141_s28 = scalar_lea.sflag (!%p572_p0), [#allocation3], %s140_s25  ;;  %s144_s29 = scalar_lea.vmem (!%p572_p0), [#allocation2], %s266_s27 }
  0x3b   : > { %394 = dma.done.wait (%p573_p8), %s141_s28, 64  }
  0x3c   : > { %396 = vsyncadd (%p573_p8), %s141_s28, 4294967232  ;;  %p574_p1 = scmp.eq.s32.totalorder %s454_s13, 0 }
  0x3e   : > { %398 = dma.done.wait (%p574_p1), [#allocation5], 64   ;;  %p575_p4 = pmov %p574_p1 }
  0x3f   : > { %v172_v0 = vld [vmem:[%s144_s29] sm:$0xf]  ;;  %v173_v1 = vld [vmem:[#allocation4] sm:$0xf]  ;;  %vm175_vm0 = vcmask 257024   ;;  %p168_p5 = scmp.lt.s32.totalorder %s454_s13, 1 }
  0x40   : > { %400 = vsyncadd (%p575_p4), [#allocation5], 4294967232  ;;  %v174_v2 = vmul.f32 %v173_v1, %v172_v0  ;;  %vm182_vm1 = vcmask 3072   ;;  %v419_v5 = vmov 0.0  }
  0x41   : > { %s581_s13 = smov (!%p168_p5, %s454_s13), 1 }
  0x42   : > { %v176_v3 = vsel %vm175_vm0, %v174_v2, 0.0  ;;  %s268_s15 = sshll.u32 %s581_s13, 2 }
  0x43   : > { %177 = vadd.xlane.f32.xlu0 %v176_v3  ;;  %s171_s3 = scalar_lea.vmem %s563_s2, %s268_s15 }
  0xcc   : > { %v178_v4 = vpop.xlane.xlu0 %177 }
  0xcd   : > { %vm179_vm2 = vcmp.gt.f32.partialorder %v178_v4, 0.0 }
  0xce   : > { %v269_v6 = vsel %vm179_vm2, 1.0, %v419_v5 }
  0xcf   : > { %183 = vst.msk [vmem:[%s171_s3] sm:$0xf] %vm182_vm1, %v269_v6 }
  0xd0 PF: > { %p13_p13 = scmp.ge.s32.totalorder %s473_s18, 4   ;;  %s576_s9 = smov %s407_s10 }
  0xd1   : > { %s577_s10 = smov %s411_s11  ;;  %s578_s11 = smov %s500_s26 }
  0xd2   : > { %s579_s12 = smov %s473_s18  ;;  %15 = sbr.rel (!%p13_p13) target bundleno = 4 (0x4), region = 72 }
  0xd7   :  { %203 = vsyncpa [#allocation3], 1 }
  0xd8   :  { %205 = vsyncpa [#allocation3 + $0x1], 1 }
  0xd9   :  { %206 = vsyncpa [#allocation5], 1 }

</bundles_post_ra>
